<compile_context>
chip_gen: v6e
topology: v6e:2x2x1
jax: 0.10.0
libtpu: 0.0.40
codegen_flags: <defaults>
</compile_context>

<pallas_src>
import jax
import jax.numpy as jnp
from jax import lax
from jax.experimental import pallas as pl
from jax.experimental.pallas import tpu as pltpu

IN_FEATURES = 23
HIDDEN = 10
OUT_FEATURES = 1


def _round_up(x, m):
    return ((x + m - 1) // m) * m


def _model_kernel(x_ref, w1_ref, b1_ref, w2_ref, b2_ref, o_ref):
    # x_ref: (TB, 23)   w1_ref: (10, 23)  b1_ref: (1, 10)
    # w2_ref: (1, 10)   b2_ref: (1, 1)    o_ref: (1, TB)   <- lane-dense output
    x = x_ref[...]

    # fc1: x @ w1^T (contract last dims of both; w1 is tiny so any relayout of
    # the transposed weight operand is negligible and grid-invariant).
    h = lax.dot_general(
        x, w1_ref[...],
        dimension_numbers=(((1,), (1,)), ((), ())),
        preferred_element_type=jnp.float32,
    )  # (TB, 10)
    h = jnp.maximum(h + b1_ref[...], 0.0)  # bias + ReLU

    # fc2 emitted transposed: w2 @ h^T -> (1, TB).  The batch tile lands on the
    # lane axis, so the output store is a full-width vst instead of a (TB, 1)
    # masked store with 1/128 useful lanes.
    y = lax.dot_general(
        w2_ref[...], h,
        dimension_numbers=(((1,), (1,)), ((), ())),
        preferred_element_type=jnp.float32,
    )  # (1, TB)
    o_ref[...] = (y + b2_ref[...]).astype(o_ref.dtype)


def model_forward(s_data, t_data, w1, b1, w2, b2, *, tb=8192):
    """Fused forward: y = ReLU(t_data @ w1^T + b1) @ w2^T + b2.

    s_data: unused (kept for signature parity with the PyTorch Model).
    t_data: (B, 23) f32
    w1: (10, 23), b1: (10,), w2: (1, 10), b2: (1,)
    returns: (B, 1) f32
    """
    del s_data  # unused by the original module's forward
    B = t_data.shape[0]

    # Large batch tile: the kernel is per-grid-step-overhead bound, so use the
    # biggest tile that comfortably fits VMEM with the lane-dense output.
    TB = min(tb, _round_up(B, 8))
    # Megacore (v7x has 2 TensorCores): if one tile would swallow a large
    # batch, split it in two so the batch axis actually shards across cores.
    if B >= 4096 and pl.cdiv(B, TB) < 2:
        TB = _round_up(-(-B // 2), 8)
    num_tiles = pl.cdiv(B, TB)

    b1_2d = b1.reshape(1, HIDDEN)
    b2_2d = b2.reshape(1, OUT_FEATURES)

    flops = 2 * B * IN_FEATURES * HIDDEN + 2 * B * HIDDEN * OUT_FEATURES
    bytes_accessed = (
        B * (IN_FEATURES + OUT_FEATURES) * 4
        + (HIDDEN * IN_FEATURES + HIDDEN + OUT_FEATURES * HIDDEN + OUT_FEATURES) * 4
    )

    out_tiles = pl.pallas_call(
        _model_kernel,
        out_shape=jax.ShapeDtypeStruct((num_tiles, TB), t_data.dtype),
        grid_spec=pltpu.PrefetchScalarGridSpec(
            num_scalar_prefetch=0,
            grid=(num_tiles,),
            in_specs=[
                # batch-tiled activations: full 23-wide rows -> one contiguous
                # TB*23*4-byte HBM slab per step (do not tile/pad the 23 axis)
                pl.BlockSpec((TB, IN_FEATURES), lambda i: (i, 0)),
                # parameters: constant index_map -> DMA'd once, VMEM-resident
                pl.BlockSpec((HIDDEN, IN_FEATURES), lambda i: (0, 0)),
                pl.BlockSpec((1, HIDDEN), lambda i: (0, 0)),
                pl.BlockSpec((OUT_FEATURES, HIDDEN), lambda i: (0, 0)),
                pl.BlockSpec((1, OUT_FEATURES), lambda i: (0, 0)),
            ],
            # lane-dense output: one (1, TB) row per grid step
            out_specs=pl.BlockSpec((1, TB), lambda i: (i, 0)),
        ),
        compiler_params=pltpu.CompilerParams(
            # Disjoint output tiles per step -> batch axis shardable across TCs.
            dimension_semantics=("parallel",),
            # >= default on v6e/v7x, raises v5e's 16 MiB default; plenty for
            # TB=8192 (input double-buffer 8 MiB + temporaries) on all gens.
            vmem_limit_bytes=32 * 1024 * 1024,
        ),
        cost_estimate=pl.CostEstimate(
            flops=flops, transcendentals=0, bytes_accessed=bytes_accessed
        ),
    )(t_data, w1, b1_2d, w2, b2_2d)

    # Rows of (num_tiles, TB) are contiguous batch chunks -> free row-major
    # reshape; drop the padded tail and restore the module's (B, 1) shape.
    return out_tiles.reshape(-1)[:B].reshape(B, OUT_FEATURES)


if __name__ == "__main__":
    key = jax.random.PRNGKey(0)
    k_s, k_t, k_w1, k_b1, k_w2, k_b2 = jax.random.split(key, 6)

    B = 16  # small batch for the demo; kernel tiles/pipelines for large B too
    s_data = jax.random.normal(k_s, (B, IN_FEATURES), dtype=jnp.float32)  # unused
    t_data = jax.random.normal(k_t, (B, IN_FEATURES), dtype=jnp.float32)

    # Deterministic params mimicking PyTorch Linear default init:
    # uniform(-1/sqrt(in_features), +1/sqrt(in_features))
    bound1 = 1.0 / (IN_FEATURES ** 0.5)
    w1 = jax.random.uniform(k_w1, (HIDDEN, IN_FEATURES), dtype=jnp.float32,
                            minval=-bound1, maxval=bound1)
    b1 = jax.random.uniform(k_b1, (HIDDEN,), dtype=jnp.float32,
                            minval=-bound1, maxval=bound1)
    bound2 = 1.0 / (HIDDEN ** 0.5)
    w2 = jax.random.uniform(k_w2, (OUT_FEATURES, HIDDEN), dtype=jnp.float32,
                            minval=-bound2, maxval=bound2)
    b2 = jax.random.uniform(k_b2, (OUT_FEATURES,), dtype=jnp.float32,
                            minval=-bound2, maxval=bound2)

    # Reference (plain JAX)
    def ref_fwd(td):
        h_ref = jnp.maximum(td @ w1.T + b1, 0.0)
        return h_ref @ w2.T + b2

    y = model_forward(s_data, t_data, w1, b1, w2, b2)
    jax.block_until_ready(y)
    assert y.shape == (B, OUT_FEATURES)
    assert jnp.allclose(y, ref_fwd(t_data), atol=1e-5, rtol=1e-5)

    # Exercise the multi-tile + ragged-batch path (partial last tile, output
    # slicing back to B rows) with a tiny tile size.
    B2 = 20
    t2 = jax.random.normal(jax.random.PRNGKey(1), (B2, IN_FEATURES), jnp.float32)
    y2 = model_forward(None, t2, w1, b1, w2, b2, tb=8)
    jax.block_until_ready(y2)
    assert y2.shape == (B2, OUT_FEATURES)
    assert jnp.allclose(y2, ref_fwd(t2), atol=1e-5, rtol=1e-5)

    print("KERNEL_OK")
</pallas_src>

<mosaic_0001>
module attributes {stable_mosaic.version = 11 : i64} {
  func.func @_model_kernel(%arg0: i32, %arg1: memref<16x23xf32, #tpu.memory_space<vmem>>, %arg2: memref<10x23xf32, #tpu.memory_space<vmem>>, %arg3: memref<1x10xf32, #tpu.memory_space<vmem>>, %arg4: memref<1x10xf32, #tpu.memory_space<vmem>>, %arg5: memref<1x1xf32, #tpu.memory_space<vmem>>, %arg6: memref<1x16xf32, #tpu.memory_space<vmem>>) attributes {dimension_semantics = [#tpu.dimension_semantics<parallel>], iteration_bounds = array<i64: 1>, scalar_prefetch = 0 : i64, scratch_operands = 0 : i64, tpu.core_type = #tpu.core_type<tc>, window_params = [{transform_indices = @transform_0, window_bounds = array<i64: 16, 23>}, {pipeline_mode = #tpu.pipeline_mode<synchronous>, transform_indices = @transform_1, window_bounds = array<i64: 10, 23>}, {pipeline_mode = #tpu.pipeline_mode<synchronous>, transform_indices = @transform_2, window_bounds = array<i64: 1, 10>}, {pipeline_mode = #tpu.pipeline_mode<synchronous>, transform_indices = @transform_3, window_bounds = array<i64: 1, 10>}, {pipeline_mode = #tpu.pipeline_mode<synchronous>, transform_indices = @transform_4, window_bounds = array<i64: 1, 1>}, {transform_indices = @transform_5, window_bounds = array<i64: 1, 16>}]} {
    %c0 = arith.constant 0 : index
    %c0_0 = arith.constant 0 : index
    %0 = vector.load %arg1[%c0, %c0_0] : memref<16x23xf32, #tpu.memory_space<vmem>>, vector<16x23xf32>
    %c0_1 = arith.constant 0 : index
    %c0_2 = arith.constant 0 : index
    %1 = vector.load %arg2[%c0_1, %c0_2] : memref<10x23xf32, #tpu.memory_space<vmem>>, vector<10x23xf32>
    %cst = arith.constant dense<0.000000e+00> : vector<16x10xf32>
    %2 = tpu.matmul %0, %1, %cst {dimension_numbers = #tpu.dot_dimension_numbers<[1], [1], [0], [0], [0, 0, 1, 0], [], []>} : vector<16x23xf32>, vector<10x23xf32>, vector<16x10xf32> -> vector<16x10xf32>
    %c0_3 = arith.constant 0 : index
    %c0_4 = arith.constant 0 : index
    %3 = vector.load %arg3[%c0_3, %c0_4] : memref<1x10xf32, #tpu.memory_space<vmem>>, vector<1x10xf32>
    %4 = vector.broadcast %3 : vector<1x10xf32> to vector<16x10xf32>
    %5 = arith.addf %2, %4 : vector<16x10xf32>
    %cst_5 = arith.constant 0.000000e+00 : f32
    %6 = vector.broadcast %cst_5 : f32 to vector<16x10xf32>
    %7 = arith.maximumf %5, %6 : vector<16x10xf32>
    %c0_6 = arith.constant 0 : index
    %c0_7 = arith.constant 0 : index
    %8 = vector.load %arg4[%c0_6, %c0_7] : memref<1x10xf32, #tpu.memory_space<vmem>>, vector<1x10xf32>
    %cst_8 = arith.constant dense<0.000000e+00> : vector<1x16xf32>
    %9 = tpu.matmul %8, %7, %cst_8 {dimension_numbers = #tpu.dot_dimension_numbers<[1], [1], [0], [0], [0, 0, 1, 0], [], []>} : vector<1x10xf32>, vector<16x10xf32>, vector<1x16xf32> -> vector<1x16xf32>
    %c0_9 = arith.constant 0 : index
    %c0_10 = arith.constant 0 : index
    %10 = vector.load %arg5[%c0_9, %c0_10] : memref<1x1xf32, #tpu.memory_space<vmem>>, vector<1x1xf32>
    %11 = vector.broadcast %10 : vector<1x1xf32> to vector<1x16xf32>
    %12 = arith.addf %9, %11 : vector<1x16xf32>
    %c0_11 = arith.constant 0 : index
    %c0_12 = arith.constant 0 : index
    %13 = vector.load %arg6[%c0_11, %c0_12] : memref<1x16xf32, #tpu.memory_space<vmem>>, vector<1x16xf32>
    tpu.vector_store %arg6[%c0_11, %c0_12], %12 {strides = array<i32>} : memref<1x16xf32, #tpu.memory_space<vmem>>, vector<1x16xf32>,
    return
  }
  func.func @transform_0(%arg0: i32) -> (i32, i32) {
    %c0_i32 = arith.constant 0 : i32
    %c0_i32_0 = arith.constant 0 : i32
    return %arg0, %c0_i32 : i32, i32
  }
  func.func @transform_1(%arg0: i32) -> (i32, i32) {
    %c0_i32 = arith.constant 0 : i32
    %c0_i32_0 = arith.constant 0 : i32
    %c0_i32_1 = arith.constant 0 : i32
    return %c0_i32, %c0_i32_0 : i32, i32
  }
  func.func @transform_2(%arg0: i32) -> (i32, i32) {
    %c0_i32 = arith.constant 0 : i32
    %c0_i32_0 = arith.constant 0 : i32
    %c0_i32_1 = arith.constant 0 : i32
    return %c0_i32, %c0_i32_0 : i32, i32
  }
  func.func @transform_3(%arg0: i32) -> (i32, i32) {
    %c0_i32 = arith.constant 0 : i32
    %c0_i32_0 = arith.constant 0 : i32
    %c0_i32_1 = arith.constant 0 : i32
    return %c0_i32, %c0_i32_0 : i32, i32
  }
  func.func @transform_4(%arg0: i32) -> (i32, i32) {
    %c0_i32 = arith.constant 0 : i32
    %c0_i32_0 = arith.constant 0 : i32
    %c0_i32_1 = arith.constant 0 : i32
    return %c0_i32, %c0_i32_0 : i32, i32
  }
  func.func @transform_5(%arg0: i32) -> (i32, i32) {
    %c0_i32 = arith.constant 0 : i32
    %c0_i32_0 = arith.constant 0 : i32
    return %arg0, %c0_i32 : i32, i32
  }
}

</mosaic_0001>

<bundles_post_ra>
// kernel: tpu_custom_call.1
= control target key start
LH: loop header
LB: loop body
LE: loop exit
PB: predicated region body
PF: predicated region fallthrough
CT: control target
= control target key end

     0   :  { %s421_s0 = inlined_call_operand.hbm [shape: f32[16,23], index: 0, kind: input, shape index: {}]   ;;  %s422_s1 = inlined_call_operand.hbm [shape: f32[10,23], index: 1, kind: input, shape index: {}]   ;;  %s423_s2 = inlined_call_operand.vmem [shape: f32[1,10], index: 2, kind: input, shape index: {}]   ;;  %s424_s3 = inlined_call_operand.vmem [shape: f32[1,10], index: 3, kind: input, shape index: {}]   ;;  %s425_s4 = inlined_call_operand.<no memory space> [shape: f32[1,1], index: 4, kind: input, shape index: {}]   ;;  %s426_s5 = inlined_call_operand.hbm [shape: f32[1,16], index: 5, kind: output, shape index: {}]  }
   0x1   :  { %v10_v0 = vstv %s425_s4 }
   0x2   :  { %11 = vst [vmem:[#allocation2] sm:$0x1] %v10_v0 }
   0x3   :  { %12 = vsyncpa [#allocation4], 0 }
   0x4   :  { %13 = vsyncpa [#allocation7], 0 }
   0x5   :  { %14 = vsyncpa [#allocation5], 0  ;;  %s365_s20 = smov [#allocation3]  }
   0x6   :  { %s20_s21 = sshll.u32 %s365_s20, 4  ;;  %s21_s21 = int_to_ptr.vmem [resolvable:$true] %s20_s21 }
   0x7   :  { %s307_s22 = scalar_lea.vmem %s21_s21, 256  ;;  %p312_p1 = scmp.lt.s32.totalorder %s21_s21, %s21_s21 }
   0x8   :  { %p308_p0 = scmp.ne.s32.totalorder %s21_s21, %s307_s22  ;;  %p313_p2 = scmp.lt.s32.totalorder %s307_s22, %s307_s22 }
   0xa   :  { %p314_p3 = por %p313_p2, %p312_p1 }
   0xc   :  { %p315_p4 = pnand %p314_p3, %p308_p0 }
   0xe   :  { %318 = shalt.err (!%p315_p4)
}
   0xf   :  { %s366_s23 = smov 128   ;;  %s367_s24 = smov 8  }
  0x10   :  { %26 = dma.hbm_to_vmem [thread:$0]  %s421_s0, 256, %s21_s21, [#allocation4], %s366_s23, %s366_s23, %s367_s24  }
  0x11   :  { %s368_s4 = smov [#allocation6]  }
  0x12   :  { %s32_s27 = sshll.u32 %s368_s4, 4  ;;  %s33_s27 = int_to_ptr.vmem [resolvable:$true] %s32_s27 }
  0x13   :  { %s327_s28 = scalar_lea.vmem %s33_s27, 256  ;;  %p332_p6 = scmp.lt.s32.totalorder %s33_s27, %s33_s27 }
  0x14   :  { %p328_p5 = scmp.ne.s32.totalorder %s33_s27, %s327_s28  ;;  %p333_p7 = scmp.lt.s32.totalorder %s327_s28, %s327_s28 }
  0x16   :  { %p334_p8 = por %p333_p7, %p332_p6 }
  0x18   :  { %p335_p9 = pnand %p334_p8, %p328_p5 }
  0x1a   :  { %338 = shalt.err (!%p335_p9)
}
  0x1b   :  { %38 = dma.hbm_to_vmem [thread:$0]  %s422_s1, 256, %s33_s27, [#allocation7], %s366_s23, %s366_s23, %s367_s24  }
  0x1c   :  { %359 = dma.done.wait [#allocation4], 256  }
  0x1d   :  { %360 = vsyncadd [#allocation4], 4294967040 }
  0x1e   :  { %361 = dma.done.wait [#allocation7], 256  }
  0x1f   :  { %362 = vsyncadd [#allocation7], 4294967040  ;;  %vm62_vm0 = vcmask 187392   ;;  %v54_v1 = vld [vmem:[#allocation6 + $0x8] sm:$0x3]  ;;  %v53_v2 = vld [vmem:[#allocation6] sm:$0xff]  ;;  %v159_v16 = vlaneseq }
  0x20   :  { %v51_v3 = vld [vmem:[#allocation3] sm:$0xff]  ;;  %276 = vmatprep.subr.msk.mxu0 %vm62_vm0, %v54_v1  ;;  %v52_v4 = vld [vmem:[#allocation3 + $0x8] sm:$0xff]  ;;  %v369_v5 = vmov 0.0   ;;  %vm370_vm1 = vmmov 0   ;;  %v153_v6 = vld [vmem:[#allocation2] sm:$0x1] }
  0x21   :  { %280 = vmatprep.mubr.msk.f32.mxu0 %vm62_vm0, %v51_v3  ;;  %277 = vmatpush3.xpose.msk.msra.mxu0 %vm62_vm0, %v54_v1  ;;  %v371_v7 = vmov 0   ;;  %v261_v8 = vld [vmem:[%s423_s2] ss:$0 sm:$0xff]  ;;  %vm163_vm2 = vcmask 80896   ;;  %v160_v17 = vshrl.u32 %v159_v16, 7  ;;  %s372_s2 = smov [#allocation8]  }
  0x22   :  { %278 = vmatprep.subr.msk.mxu0 %vm62_vm0, %v53_v2  ;;  %283 = vmatprep.subr.mxu1 %v369_v5  ;;  %v152_v15 = vld [vmem:[%s424_s3] sm:$0x1]  ;;  %s251_s8 = sshll.u32 %s372_s2, 4  ;;  %vm243_vm3 = vcmask 122880   ;;  %s252_s8 = int_to_ptr.vmem [resolvable:$true] %s251_s8 }
  0x23   :  { %287 = vmatprep.mubr.msk.f32.mxu1 %vm370_vm1, %v369_v5  ;;  %298 = vset.pattern.permute.xlu0 %v371_v7  ;;  %v161_v18 = vsub.s32 0, %v160_v17  ;;  %s339_s9 = scalar_lea.vmem %s252_s8, 16  ;;  %s343_s10 = scalar_lea.vmem %s252_s8, 32 }
  0x24   :  { %156 = vperm.xlu0 %298, %v153_v6   ;;  %p340_p10 = scmp.ne.s32.totalorder %s252_s8, %s339_s9  ;;  %p344_p11 = scmp.lt.s32.totalorder %s252_s8, %s252_s8 }
  0x25   :  { %279 = vmatpush3.xpose.msk.msra.mxu0 %vm62_vm0, %v53_v2  ;;  %p345_p12 = scmp.lt.s32.totalorder %s343_s10, %s339_s9 }
  0x27   :  { %p346_p13 = por %p345_p12, %p344_p11 }
  0x28   :  { %281 = vmatmul.mubr.msk.f32.vlgmr.msra.gmra.mxu0 %vm62_vm0, %v52_v4 }
  0x29   :  { %p347_p0 = pnand %p346_p13, %p340_p10 }
  0x9f   :  { %v157_v19 = vpop.permute.xlu0 %156 }
  0xa0   :  { %v162_v20 = vrot.slane %v157_v19, %v161_v18 }
  0xe8   :  { %v282_v9 = vpop.f32.mrf.mxu0 }
  0xe9   :  { %v147_v10 = vadd.f32 %v282_v9, %v261_v8 }
  0xea   :  { %v141_v11 = vpop.f32.mrf.mxu0 }
  0xeb   :  { %v151_v12 = vmax.f32 %v147_v10, 0.0  ;;  %v142_v13 = vadd.f32 %v261_v8, %v141_v11 }
  0xed   :  { %284 = vmatpush3.xpose.msk.msra.mxu1 %vm163_vm2, %v151_v12  ;;  %v150_v14 = vmax.f32 %v142_v13, 0.0 }
  0xee   :  { %285 = vmatprep.subr.mxu1 %v369_v5 }
  0xf1   :  { %286 = vmatpush3.xpose.msk.msra.mxu1 %vm163_vm2, %v150_v14 }
  0xf4   :  { %288 = vmatmul.mubr.msk.f32.vlgmr.msra.gmra.mxu1 %vm163_vm2, %v152_v15 }
 0x1b4   :  { %v239_v21 = vpop.f32.mrf.mxu1 }
 0x1b5   :  { %v240_v22 = vadd.f32 %v239_v21, %v162_v20 }
 0x1b6   :  { %v289_v23 = vpop.f32.mrf.mxu1 }
 0x1b7   :  { %244 = vst.msk [vmem:[#allocation8] sm:$0x1] %vm243_vm3, %v240_v22 }
 0x1b8   :  { %350 = shalt.err (!%p347_p0)
}
 0x1b9   :  { %254 = dma.vmem_to_hbm [thread:$0]  %s252_s8, 16, %s426_s5, [#allocation5]  }
 0x1ba   :  { %363 = dma.done.wait [#allocation5], 16  }
 0x1bb   :  { %364 = vsyncadd [#allocation5], 4294967280 }
 0x1bc   :  { %258 = vsyncpa [#allocation4], 1 }
 0x1bd   :  { %259 = vsyncpa [#allocation7], 1 }
 0x1be   :  { %260 = vsyncpa [#allocation5], 1 }

</bundles_post_ra>
